<compile_context>
chip_gen: v6e
topology: v6e:2x2x1
jax: 0.10.0
libtpu: 0.0.40
codegen_flags: <defaults>
</compile_context>

<pallas_src>
import functools

import jax
import jax.numpy as jnp
from jax.experimental import pallas as pl
from jax.experimental.pallas import tpu as pltpu

_NEG_BIG = -1.0e30  # bias for padded classes -> exp() == 0, never argmax'd


def _round_up(x, m):
    return ((x + m - 1) // m) * m


def _cls_head_kernel(h_ref, w_ref, b_ref, probs_ref, acc_ref, *,
                     inv_s, seq_rem, n_seq):
    # h_ref:     [TB, TS, H] (native dtype) tile of last_hidden_state
    # w_ref:     [H, C_pad]  bf16  cls weight (transposed, class-padded)
    # b_ref:     [1, C_pad]  f32   cls bias (padded lanes = -1e30)
    # probs_ref: [TB, C_pad] f32   softmax(logits) output block
    # acc_ref:   [TB, H]     f32   running sum over the sequence axis

    def tile_sum(masked):
        if masked:
            # `seq_rem` is a static Python int: slice off the undefined tail
            # rows of the last sequence block before reducing.
            return jnp.sum(h_ref[:, :seq_rem, :], axis=1, dtype=jnp.float32)
        return jnp.sum(h_ref[...], axis=1, dtype=jnp.float32)

    def finalize(acc_f32):
        # logits = mean(h) @ W + b, with the 1/S scale folded in post-matmul.
        # bf16 x bf16 on the MXU with f32 accumulation.
        logits = jnp.dot(acc_f32.astype(jnp.bfloat16), w_ref[...],
                         preferred_element_type=jnp.float32)      # [TB, C_pad]
        logits = logits * inv_s + b_ref[...]

        # softmax over the (padded) class lanes; padded lanes give exp() == 0.
        m = jnp.max(logits, axis=-1, keepdims=True)
        e = jnp.exp(logits - m)
        denom = jnp.sum(e, axis=-1, keepdims=True)
        probs_ref[...] = e * pl.reciprocal(denom, approx=True)

    if n_seq == 1:
        # Single sequence step: no zero-init / read-modify-write of acc_ref.
        finalize(tile_sum(masked=seq_rem > 0))
        return

    j = pl.program_id(1)
    last = n_seq - 1

    @pl.when(j == 0)
    def _():
        acc_ref[...] = jnp.zeros_like(acc_ref)

    if seq_rem > 0:
        @pl.when(j < last)
        def _():
            acc_ref[...] += tile_sum(masked=False)

        @pl.when(j == last)
        def _():
            acc_ref[...] += tile_sum(masked=True)
    else:
        acc_ref[...] += tile_sum(masked=False)

    @pl.when(j == last)
    def _():
        finalize(acc_ref[...])


def classification_head(last_hidden_state, w, b):
    """last_hidden_state: [B, S, H] (consumed in its native dtype, no wrapper
    cast/pad of the large tensor); w: [C, H] (torch Linear layout); b: [C].

    Returns (probs [B, C] float32, preds [B] int32).
    """
    B, S, H = last_hidden_state.shape
    C = b.shape[0]
    itemsize = jnp.dtype(last_hidden_state.dtype).itemsize

    # ---- hardware query ---------------------------------------------------
    try:
        vmem_cap = int(pltpu.get_tpu_info().vmem_capacity_bytes)
    except Exception:
        vmem_cap = 64 << 20                    # conservative (v7x-sized) fallback
    big_vmem = vmem_cap >= (96 << 20)          # v5e/v6e: 128 MiB ; v7x: 64 MiB

    # ---- tile selection ---------------------------------------------------
    # Batch tile: 32 on 128-MiB parts, 16 on v7x; keep >=2 batch blocks when B
    # allows so the "parallel" batch axis feeds both v7x TensorCores.
    tb_pref = 32 if big_vmem else 16
    if B <= 8:
        TB = 8
    elif B <= tb_pref:
        TB = _round_up(B, 8) if big_vmem else _round_up(pl.cdiv(B, 2), 8)
    else:
        TB = tb_pref

    # Sequence tile from a per-generation byte budget (multiple of 16 to match
    # bf16 sublane packing of the streamed tile).
    tile_budget = (24 << 20) if big_vmem else (12 << 20)
    ts_cap = max(16, (tile_budget // (TB * H * itemsize)) // 16 * 16)
    TS = min(ts_cap, _round_up(S, 16))

    n_b = pl.cdiv(B, TB)
    n_seq = pl.cdiv(S, TS)
    seq_rem = S % TS                           # static; >0 -> mask last seq block
    grid = (n_b, n_seq)
    inv_s = 1.0 / float(S)

    # ---- small operands only (class dim padded lane-dense to 128) ---------
    C_pad = _round_up(max(C, 128), 128)
    w_t = jnp.zeros((H, C_pad), jnp.bfloat16).at[:, :C].set(
        w.astype(jnp.bfloat16).T)                                  # [H, C_pad]
    b2 = jnp.full((1, C_pad), _NEG_BIG, jnp.float32).at[:, :C].set(
        b.astype(jnp.float32))                                     # [1, C_pad]

    # ---- VMEM budget: 2x input tile + f32 reduce-temp headroom + fixed -----
    in_tile_bytes = TB * TS * H * itemsize
    reduce_tmp_bytes = TB * TS * H * 4
    fixed_bytes = H * C_pad * 2 + C_pad * 4 + TB * C_pad * 4 + TB * H * 4
    vmem_needed = 2 * in_tile_bytes + reduce_tmp_bytes + 2 * fixed_bytes + (2 << 20)
    vmem_limit = int(min(max(vmem_needed, 16 << 20), vmem_cap - (8 << 20)))

    cost = pl.CostEstimate(
        flops=B * S * H + 2 * (n_b * TB) * H * C_pad,
        transcendentals=(n_b * TB) * C_pad,
        bytes_accessed=B * S * H * itemsize + H * C_pad * 2 + B * C_pad * 4,
    )

    probs_pad = pl.pallas_call(
        functools.partial(_cls_head_kernel, inv_s=inv_s,
                          seq_rem=seq_rem, n_seq=n_seq),
        out_shape=jax.ShapeDtypeStruct((B, C_pad), jnp.float32),
        grid_spec=pltpu.PrefetchScalarGridSpec(
            num_scalar_prefetch=0,
            grid=grid,
            in_specs=[
                pl.BlockSpec((TB, TS, H), lambda i, j: (i, j, 0)),
                pl.BlockSpec((H, C_pad), lambda i, j: (0, 0)),
                pl.BlockSpec((1, C_pad), lambda i, j: (0, 0)),
            ],
            out_specs=pl.BlockSpec((TB, C_pad), lambda i, j: (i, 0)),
            scratch_shapes=[pltpu.VMEM((TB, H), jnp.float32)],
        ),
        compiler_params=pltpu.CompilerParams(
            dimension_semantics=("parallel", "arbitrary"),
            vmem_limit_bytes=vmem_limit,
        ),
        cost_estimate=cost,
    )(last_hidden_state, w_t, b2)

    probs = probs_pad[:, :C]
    # exp() and the (positive) row rescale preserve ordering, and padded
    # classes have probability 0, so argmax(probs) == argmax(logits).
    preds = jnp.argmax(probs, axis=1).astype(jnp.int32)
    return probs, preds


if __name__ == "__main__":
    # Small, deterministic example consistent with the module:
    # hidden size must be 768 (Linear(768, num_class)); batch=2, seq=8, classes=16.
    B, S, H, C = 2, 8, 768, 16
    key = jax.random.PRNGKey(0)
    k_h, k_w, k_b = jax.random.split(key, 3)

    # Synthetic encoder output, already bf16 (what a TPU encoder would hand
    # over); the kernel wrapper does NOT cast or pad this tensor.
    last_hidden_state = jax.random.normal(
        k_h, (B, S, H), dtype=jnp.float32).astype(jnp.bfloat16)
    # Deterministic init for the cls Linear(768, num_class) parameters.
    cls_w = jax.random.normal(k_w, (C, H), dtype=jnp.float32) * 0.02   # torch [out, in]
    cls_b = jax.random.normal(k_b, (C,), dtype=jnp.float32) * 0.02

    probs, preds = classification_head(last_hidden_state, cls_w, cls_b)
    jax.block_until_ready((probs, preds))

    # Reference in plain JAX, following the kernel's intentional precision
    # path (bf16 activations, bf16 pooled x bf16 weights, f32 accumulation).
    pooled = last_hidden_state.astype(jnp.float32).mean(axis=1)
    logits_ref = jnp.dot(pooled.astype(jnp.bfloat16),
                         cls_w.astype(jnp.bfloat16).T,
                         preferred_element_type=jnp.float32) + cls_b
    probs_ref = jax.nn.softmax(logits_ref, axis=1)
    preds_ref = jnp.argmax(logits_ref, axis=1).astype(jnp.int32)

    assert probs.shape == (B, C) and preds.shape == (B,)
    assert jnp.allclose(probs, probs_ref, atol=2e-3), "softmax mismatch"
    assert jnp.allclose(jnp.sum(probs, axis=1), 1.0, atol=2e-3), "softmax not normalized"
    assert jnp.array_equal(preds, preds_ref), "argmax mismatch"

    print("KERNEL_OK")
</pallas_src>

<mosaic_0001>
module attributes {stable_mosaic.version = 11 : i64} {
  func.func @_cls_head_kernel(%arg0: i32, %arg1: i32, %arg2: memref<8x16x768xbf16, #tpu.memory_space<vmem>>, %arg3: memref<768x128xbf16, #tpu.memory_space<vmem>>, %arg4: memref<1x128xf32, #tpu.memory_space<vmem>>, %arg5: memref<8x128xf32, #tpu.memory_space<vmem>>, %arg6: memref<8x768xf32, #tpu.memory_space<vmem>>) attributes {dimension_semantics = [#tpu.dimension_semantics<parallel>, #tpu.dimension_semantics<arbitrary>], iteration_bounds = array<i64: 1, 1>, scalar_prefetch = 0 : i64, scratch_operands = 1 : i64, tpu.core_type = #tpu.core_type<tc>, window_params = [{transform_indices = @transform_0, window_bounds = array<i64: 8, 16, 768>}, {pipeline_mode = #tpu.pipeline_mode<synchronous>, transform_indices = @transform_1, window_bounds = array<i64: 768, 128>}, {pipeline_mode = #tpu.pipeline_mode<synchronous>, transform_indices = @transform_2, window_bounds = array<i64: 1, 128>}, {transform_indices = @transform_3, window_bounds = array<i64: 8, 128>}]} {
    %c0 = arith.constant 0 : index
    %c0_0 = arith.constant 0 : index
    %c0_1 = arith.constant 0 : index
    %0 = vector.load %arg2[%c0, %c0_0, %c0_1] : memref<8x16x768xbf16, #tpu.memory_space<vmem>>, vector<8x8x768xbf16>
    %1 = arith.extf %0 : vector<8x8x768xbf16> to vector<8x8x768xf32>
    %cst = arith.constant dense<0.000000e+00> : vector<8x768xf32>
    %2 = vector.multi_reduction <add>, %1, %cst [1] : vector<8x8x768xf32> to vector<8x768xf32>
    %3 = arith.truncf %2 : vector<8x768xf32> to vector<8x768xbf16>
    %c0_2 = arith.constant 0 : index
    %c0_3 = arith.constant 0 : index
    %4 = vector.load %arg3[%c0_2, %c0_3] : memref<768x128xbf16, #tpu.memory_space<vmem>>, vector<768x128xbf16>
    %cst_4 = arith.constant dense<0.000000e+00> : vector<8x128xf32>
    %5 = tpu.matmul %3, %4, %cst_4 {dimension_numbers = #tpu.dot_dimension_numbers<[1], [0], [0], [1], [0, 0, 1, 1], [], []>} : vector<8x768xbf16>, vector<768x128xbf16>, vector<8x128xf32> -> vector<8x128xf32>
    %cst_5 = arith.constant 1.250000e-01 : f32
    %6 = vector.broadcast %cst_5 : f32 to vector<8x128xf32>
    %7 = arith.mulf %5, %6 : vector<8x128xf32>
    %c0_6 = arith.constant 0 : index
    %c0_7 = arith.constant 0 : index
    %8 = vector.load %arg4[%c0_6, %c0_7] : memref<1x128xf32, #tpu.memory_space<vmem>>, vector<1x128xf32>
    %9 = vector.broadcast %8 : vector<1x128xf32> to vector<8x128xf32>
    %10 = arith.addf %7, %9 : vector<8x128xf32>
    %cst_8 = arith.constant dense<0xFF800000> : vector<8xf32>
    %11 = vector.multi_reduction <maximumf>, %10, %cst_8 [1] : vector<8x128xf32> to vector<8xf32>
    %12 = vector.shape_cast %11 : vector<8xf32> to vector<8x1xf32>
    %13 = vector.broadcast %12 : vector<8x1xf32> to vector<8x128xf32>
    %14 = arith.subf %10, %13 : vector<8x128xf32>
    %15 = math.exp %14 : vector<8x128xf32>
    %cst_9 = arith.constant dense<0.000000e+00> : vector<8xf32>
    %16 = vector.multi_reduction <add>, %15, %cst_9 [1] : vector<8x128xf32> to vector<8xf32>
    %17 = vector.shape_cast %16 : vector<8xf32> to vector<8x1xf32>
    %18 = tpu.reciprocal %17 {approx = true} : vector<8x1xf32> -> vector<8x1xf32>
    %19 = vector.broadcast %18 : vector<8x1xf32> to vector<8x128xf32>
    %20 = arith.mulf %15, %19 : vector<8x128xf32>
    %c0_10 = arith.constant 0 : index
    %c0_11 = arith.constant 0 : index
    %21 = vector.load %arg5[%c0_10, %c0_11] : memref<8x128xf32, #tpu.memory_space<vmem>>, vector<8x128xf32>
    tpu.vector_store %arg5[%c0_10, %c0_11], %20 {strides = array<i32>} : memref<8x128xf32, #tpu.memory_space<vmem>>, vector<8x128xf32>,
    return
  }
  func.func @transform_0(%arg0: i32, %arg1: i32) -> (i32, i32, i32) {
    %c0_i32 = arith.constant 0 : i32
    %c0_i32_0 = arith.constant 0 : i32
    return %arg0, %arg1, %c0_i32 : i32, i32, i32
  }
  func.func @transform_1(%arg0: i32, %arg1: i32) -> (i32, i32) {
    %c0_i32 = arith.constant 0 : i32
    %c0_i32_0 = arith.constant 0 : i32
    %c0_i32_1 = arith.constant 0 : i32
    return %c0_i32, %c0_i32_0 : i32, i32
  }
  func.func @transform_2(%arg0: i32, %arg1: i32) -> (i32, i32) {
    %c0_i32 = arith.constant 0 : i32
    %c0_i32_0 = arith.constant 0 : i32
    %c0_i32_1 = arith.constant 0 : i32
    return %c0_i32, %c0_i32_0 : i32, i32
  }
  func.func @transform_3(%arg0: i32, %arg1: i32) -> (i32, i32) {
    %c0_i32 = arith.constant 0 : i32
    %c0_i32_0 = arith.constant 0 : i32
    return %arg0, %c0_i32 : i32, i32
  }
}

</mosaic_0001>

<bundles_post_ra>
// kernel: tpu_custom_call.1
= control target key start
LH: loop header
LB: loop body
LE: loop exit
PB: predicated region body
PF: predicated region fallthrough
CT: control target
= control target key end

     0   :  { %8 = vsyncpa [#allocation4], 0  ;;  %s1682_s0 = inlined_call_operand.hbm [shape: bf16[2,8,768], index: 0, kind: input, shape index: {}]   ;;  %s1683_s1 = inlined_call_operand.hbm [shape: bf16[768,128], index: 1, kind: input, shape index: {}]   ;;  %s1684_s2 = inlined_call_operand.vmem [shape: f32[1,128], index: 2, kind: input, shape index: {}]   ;;  %s1685_s3 = inlined_call_operand.hbm [shape: f32[2,128], index: 3, kind: output, shape index: {}]  }
   0x1   :  { %9 = vsyncpa [#allocation7], 0 }
   0x2   :  { %10 = vsyncpa [#allocation5], 0 }
   0x3   :  { %15 = vsyncadd [#allocation4], 5376  ;;  %s20_s12 = sld [smem:[#allocation0]]   ;;  %s1403_s13 = smov [#allocation3]  }
   0x4   :  { %s28_s14 = sshll.u32 %s1403_s13, 4  ;;  %s1404_s15 = smov 384   ;;  %s29_s14 = int_to_ptr.vmem [resolvable:$true] %s28_s14 }
   0x5   :  { %35 = sst [smem:[#allocation10]] %s1404_s15  ;;  %s1405_s16 = smov 768  }
   0x6   :  { %37 = sst [smem:[#allocation10 + $0x1]] %s1405_s16  ;;  %s1406_s17 = smov 1  }
   0x7   :  { %39 = sst [smem:[#allocation10 + $0x2]] %s1406_s17  ;;  %s1407_s20 = smov 24  }
   0x8   :  { %41 = sst [smem:[#allocation10 + $0x3]] %s1404_s15  ;;  %s1408_s21 = smov [#allocation4]  }
   0x9   :  { %s1175_s18 = sshll.u32 %s20_s12, 26  ;;  %43 = sst [smem:[#allocation10 + $0x4]] %s1404_s15 }
   0xa   :  { %s1176_s19 = sadd.s32 134217728, %s1175_s18  ;;  %45 = sst [smem:[#allocation10 + $0x5]] %s1407_s20 }
   0xb   :  { %s1409_s22 = smov 131072   ;;  %s1410_s25 = smov [#allocation6]  }
   0xc   :  { %47 = dma.general %s1682_s0, 768, %s29_s14, %s1408_s21, %s1409_s22, [#allocation10], %s1176_s19, 0  }
   0xd   :  { %s53_s26 = sshll.u32 %s1410_s25, 4  ;;  %s54_s26 = int_to_ptr.vmem [resolvable:$true] %s53_s26 }
   0xe   :  { %s1365_s27 = scalar_lea.vmem %s54_s26, 6144  ;;  %p1370_p1 = scmp.lt.s32.totalorder %s54_s26, %s54_s26 }
   0xf   :  { %p1366_p0 = scmp.ne.s32.totalorder %s54_s26, %s1365_s27  ;;  %p1371_p2 = scmp.lt.s32.totalorder %s1365_s27, %s1365_s27 }
  0x11   :  { %p1372_p3 = por %p1371_p2, %p1370_p1 }
  0x13   :  { %p1373_p4 = pnand %p1372_p3, %p1366_p0 }
  0x15   :  { %1376 = shalt.err (!%p1373_p4)
}
  0x16   :  { %s1411_s28 = smov 64   ;;  %s1412_s29 = smov 4  }
  0x17   :  { %59 = dma.hbm_to_vmem [thread:$0]  %s1683_s1, 6144, %s54_s26, [#allocation7], %s1411_s28, %s1411_s28, %s1412_s29  }
  0x18   :  { %1397 = dma.done.wait [#allocation4], 6144  }
  0x19   :  { %1398 = vsyncadd [#allocation4], 4294961152 }
  0x1a   :  { %1399 = dma.done.wait [#allocation7], 6144  }
  0x1b   :  { %1400 = vsyncadd [#allocation7], 4294961152  ;;  %v1305_v0 = vld [vmem:[#allocation6 + $0x78] sm:$0xff]   ;;  %v1309_v4 = vld [vmem:[#allocation6 + $0x70] sm:$0xff]   ;;  %vm669_vm0 = vcmask 1041409   ;;  %vm671_vm1 = vcmask 1042434  }
  0x1c   :  { %v1306_v1 = vld [vmem:[#allocation6 + $0xf8] sm:$0xff]   ;;  %1226 = vmatprep.subr.bf16.mxu0 %v1305_v0  ;;  %v1310_v5 = vld [vmem:[#allocation6 + $0xf0] sm:$0xff]   ;;  %v1313_v8 = vld [vmem:[#allocation6 + $0x68] sm:$0xff]   ;;  %vm673_vm2 = vcmask 1043459   ;;  %vm675_vm3 = vcmask 1044484   ;;  %vm677_vm4 = vcmask 1045509  }
  0x1d   :  { %v1307_v2 = vld [vmem:[#allocation6 + $0x38] sm:$0xff]   ;;  %1248 = vmatprep.subr.bf16.mxu1 %v1306_v1  ;;  %v1311_v6 = vld [vmem:[#allocation6 + $0x30] sm:$0xff]   ;;  %v1314_v9 = vld [vmem:[#allocation6 + $0xe8] sm:$0xff]   ;;  %vm679_vm5 = vcmask 1046534   ;;  %vm681_vm6 = vcmask 1047559  }
  0x1e   :  { %v1308_v3 = vld [vmem:[#allocation6 + $0xb8] sm:$0xff]   ;;  %1227 = vmatpush3.bf16.msra.mxu0 %v1307_v2  ;;  %v1312_v7 = vld [vmem:[#allocation6 + $0xb0] sm:$0xff]   ;;  %v1315_v10 = vld [vmem:[#allocation6 + $0x28] sm:$0xff]  }
  0x1f   :  { %1249 = vmatpush3.bf16.msra.mxu1 %v1308_v3  ;;  %1228 = vmatprep.subr.bf16.mxu0 %v1309_v4  ;;  %v1316_v11 = vld [vmem:[#allocation6 + $0xa8] sm:$0xff]   ;;  %v1317_v12 = vld [vmem:[#allocation6 + $0x60] sm:$0xff]   ;;  %v1321_v16 = vld [vmem:[#allocation6 + $0x58] sm:$0xff]  }
  0x20   :  { %1250 = vmatprep.subr.bf16.mxu1 %v1310_v5  ;;  %v1318_v13 = vld [vmem:[#allocation6 + $0xe0] sm:$0xff]   ;;  %v1322_v17 = vld [vmem:[#allocation6 + $0xd8] sm:$0xff]   ;;  %v1325_v20 = vld [vmem:[#allocation6 + $0x50] sm:$0xff]  }
  0x21   :  { %v1319_v14 = vld [vmem:[#allocation6 + $0x20] sm:$0xff]   ;;  %v1323_v18 = vld [vmem:[#allocation6 + $0x18] sm:$0xff]   ;;  %v1326_v21 = vld [vmem:[#allocation6 + $0xd0] sm:$0xff]  }
  0x22   :  { %1229 = vmatpush3.bf16.msra.mxu0 %v1311_v6  ;;  %v1320_v15 = vld [vmem:[#allocation6 + $0xa0] sm:$0xff]   ;;  %v1324_v19 = vld [vmem:[#allocation6 + $0x98] sm:$0xff]   ;;  %v1327_v22 = vld [vmem:[#allocation6 + $0x10] sm:$0xff]  }
  0x23   :  { %1251 = vmatpush3.bf16.msra.mxu1 %v1312_v7  ;;  %1230 = vmatprep.subr.bf16.mxu0 %v1313_v8  ;;  %v1328_v23 = vld [vmem:[#allocation6 + $0x90] sm:$0xff]   ;;  %v1329_v24 = vld [vmem:[#allocation6 + $0x48] sm:$0xff]   ;;  %v1333_v28 = vld [vmem:[#allocation6 + $0x40] sm:$0xff]  }
  0x24   :  { %1252 = vmatprep.subr.bf16.mxu1 %v1314_v9  ;;  %v1330_v25 = vld [vmem:[#allocation6 + $0xc8] sm:$0xff]   ;;  %v1334_v29 = vld [vmem:[#allocation6 + $0xc0] sm:$0xff]   ;;  %v1444_v33 = vld [vmem:[#allocation3 + $0x30] sm:$0xff] }
  0x25   :  { %v1331_v26 = vld [vmem:[#allocation6 + $0x8] sm:$0xff]   ;;  %v1335_v30 = vld [vmem:[#allocation6] sm:$0xff]   ;;  %v1448_v35 = vld [vmem:[#allocation3 + $0x90] sm:$0xff]  ;;  %v99_v40 = vunpack.c.l.bf16 %v1444_v33  ;;  %v100_v41 = vunpack.c.h.bf16 %v1444_v33 }
  0x26   :  { %1231 = vmatpush3.bf16.msra.mxu0 %v1315_v10  ;;  %v1332_v27 = vld [vmem:[#allocation6 + $0x88] sm:$0xff]   ;;  %v1336_v31 = vld [vmem:[#allocation6 + $0x80] sm:$0xff]   ;;  %v1452_v37 = vld [vmem:[#allocation3 + $0xf0] sm:$0xff]  ;;  %v111_v46 = vunpack.c.l.bf16 %v1448_v35  ;;  %v112_v47 = vunpack.c.h.bf16 %v1448_v35 }
  0x27   :  { %1253 = vmatpush3.bf16.msra.mxu1 %v1316_v11  ;;  %1232 = vmatprep.subr.bf16.mxu0 %v1317_v12  ;;  %v1442_v32 = vld [vmem:[#allocation3] sm:$0xff]  ;;  %v1460_v43 = vld [vmem:[#allocation3 + $0x150] sm:$0xff]  ;;  %v123_v50 = vunpack.c.l.bf16 %v1452_v37  ;;  %v124_v51 = vunpack.c.h.bf16 %v1452_v37  ;;  %v183_v57 = vrot.slane %v100_v41, 4  ;;  %v1337_v60 = vld [vmem:[#allocation6 + $0x178] sm:$0xff]  }
  0x28   :  { %1254 = vmatprep.subr.bf16.mxu1 %v1318_v13  ;;  %v1446_v34 = vld [vmem:[#allocation3 + $0x60] sm:$0xff]  ;;  %v93_v38 = vunpack.c.l.bf16 %v1442_v32  ;;  %v94_v39 = vunpack.c.h.bf16 %v1442_v32  ;;  %v135_v54 = vunpack.c.l.bf16 %v1460_v43  ;;  %v136_v55 = vunpack.c.h.bf16 %v1460_v43 }
  0x29   :  { %v1450_v36 = vld [vmem:[#allocation3 + $0xc0] sm:$0xff]  ;;  %v105_v44 = vunpack.c.l.bf16 %v1446_v34  ;;  %v106_v45 = vunpack.c.h.bf16 %v1446_v34  ;;  %v255_v59 = vrot.slane %v112_v47, 4  ;;  %v327_v62 = vrot.slane %v124_v51, 4 }
  0x2a   :  { %1233 = vmatpush3.bf16.msra.mxu0 %v1319_v14  ;;  %v1458_v42 = vld [vmem:[#allocation3 + $0x120] sm:$0xff]  ;;  %v117_v48 = vunpack.c.l.bf16 %v1450_v36  ;;  %v118_v49 = vunpack.c.h.bf16 %v1450_v36  ;;  %v147_v56 = vrot.slane %v94_v39, 4  ;;  %v399_v0 = vrot.slane %v136_v55, 4 }
  0x2b   :  { %1255 = vmatpush3.bf16.msra.mxu1 %v1320_v15  ;;  %1234 = vmatprep.subr.bf16.mxu0 %v1321_v16  ;;  %v129_v52 = vunpack.c.l.bf16 %v1458_v42  ;;  %v130_v53 = vunpack.c.h.bf16 %v1458_v42  ;;  %v219_v58 = vrot.slane %v106_v45, 4  ;;  %v184_v2 = vadd.f32 %v183_v57, %v100_v41  ;;  %v1474_v57 = vld [vmem:[#allocation3 + $0x8] sm:$0xff] }
  0x2c   :  { %1256 = vmatprep.subr.bf16.mxu1 %v1322_v17  ;;  %v291_v61 = vrot.slane %v118_v49, 4  ;;  %v148_v1 = vadd.f32 %v147_v56, %v94_v39  ;;  %v256_v4 = vadd.f32 %v255_v59, %v112_v47  ;;  %v328_v6 = vadd.f32 %v327_v62, %v124_v51 }
  0x2d   :  { %v363_v63 = vrot.slane %v130_v53, 4  ;;  %v220_v3 = vadd.f32 %v219_v58, %v106_v45  ;;  %v400_v8 = vadd.f32 %v399_v0, %v136_v55  ;;  %v185_v10 = vrot.slane %v184_v2, 2  ;;  %v1476_v58 = vld [vmem:[#allocation3 + $0x38] sm:$0xff] }
  0x2e   :  { %1235 = vmatpush3.bf16.msra.mxu0 %v1323_v18  ;;  %v292_v5 = vadd.f32 %v291_v61, %v118_v49  ;;  %v149_v9 = vrot.slane %v148_v1, 2  ;;  %v257_v12 = vrot.slane %v256_v4, 2  ;;  %v329_v14 = vrot.slane %v328_v6, 2 }
  0x2f   :  { %1257 = vmatpush3.bf16.msra.mxu1 %v1324_v19  ;;  %1236 = vmatprep.subr.bf16.mxu0 %v1325_v20  ;;  %v364_v7 = vadd.f32 %v363_v63, %v130_v53  ;;  %v221_v11 = vrot.slane %v220_v3, 2  ;;  %v401_v16 = vrot.slane %v400_v8, 2  ;;  %v186_v18 = vadd.f32 %v185_v10, %v184_v2  ;;  %v1478_v63 = vld [vmem:[#allocation3 + $0x68] sm:$0xff] }
  0x30   :  { %1258 = vmatprep.subr.bf16.mxu1 %v1326_v21  ;;  %v293_v13 = vrot.slane %v292_v5, 2  ;;  %v150_v17 = vadd.f32 %v149_v9, %v148_v1  ;;  %v258_v20 = vadd.f32 %v257_v12, %v256_v4  ;;  %v1480_v4 = vld [vmem:[#allocation3 + $0x98] sm:$0xff]  ;;  %v1482_v9 = vld [vmem:[#allocation3 + $0xc8] sm:$0xff] }
  0x31   :  { %v365_v15 = vrot.slane %v364_v7, 2  ;;  %v222_v19 = vadd.f32 %v221_v11, %v220_v3 }
  0x32   :  { %1237 = vmatpush3.bf16.msra.mxu0 %v1327_v22  ;;  %v294_v21 = vadd.f32 %v293_v13, %v292_v5  ;;  %v330_v22 = vadd.f32 %v329_v14, %v328_v6  ;;  %v1484_v14 = vld [vmem:[#allocation3 + $0xf8] sm:$0xff] }
  0x33   :  { %1259 = vmatpush3.bf16.msra.mxu1 %v1328_v23  ;;  %1238 = vmatprep.subr.bf16.mxu0 %v1329_v24  ;;  %v366_v23 = vadd.f32 %v365_v15, %v364_v7  ;;  %v402_v24 = vadd.f32 %v401_v16, %v400_v8  ;;  %v1487_v16 = vld [vmem:[#allocation3 + $0x128] sm:$0xff] }
  0x34   :  { %1260 = vmatprep.subr.bf16.mxu1 %v1330_v25  ;;  %v151_v25 = vrot.slane %v150_v17, 1 }
  0x35   :  { %v403_v39 = vrot.slane %v402_v24, 1 }
  0x36   :  { %1239 = vmatpush3.bf16.msra.mxu0 %v1331_v26  ;;  %v187_v26 = vrot.slane %v186_v18, 1  ;;  %v152_v41 = vadd.f32 %v151_v25, %v150_v17  ;;  %v95_v17 = vunpack.c.l.bf16 %v1474_v57 }
  0x37   :  { %1261 = vmatpush3.bf16.msra.mxu1 %v1332_v27  ;;  %1240 = vmatprep.subr.bf16.mxu0 %v1333_v28  ;;  %v223_v27 = vrot.slane %v222_v19, 1  ;;  %v259_v28 = vrot.slane %v258_v20, 1  ;;  %v404_v56 = vadd.f32 %v403_v39, %v402_v24  ;;  %v108_v24 = vunpack.c.h.bf16 %v1478_v63 }
  0x38   :  { %1262 = vmatprep.subr.bf16.mxu1 %v1334_v29  ;;  %v295_v29 = vrot.slane %v294_v21, 1  ;;  %v188_v45 = vadd.f32 %v187_v26, %v186_v18  ;;  %v430_v59 = vpack.c.bf16 %v152_v41, %v152_v41  ;;  %v96_v18 = vunpack.c.h.bf16 %v1474_v57 }
  0x39   :  { %v224_v47 = vadd.f32 %v223_v27, %v222_v19  ;;  %v260_v49 = vadd.f32 %v259_v28, %v258_v20  ;;  %v472_v3 = vpack.c.bf16 %v404_v56, %v404_v56  ;;  %v101_v19 = vunpack.c.l.bf16 %v1476_v58 }
  0x3a   :  { %1241 = vmatpush3.bf16.msra.mxu0 %v1335_v30  ;;  %v331_v30 = vrot.slane %v330_v22, 1  ;;  %v296_v51 = vadd.f32 %v295_v29, %v294_v21  ;;  %v622_v5 = vunpack.c.l.b16 %v430_v59  ;;  %v1493_v21 = vld [vmem:[#allocation3 + $0x158] sm:$0xff]  ;;  %v113_v26 = vunpack.c.l.bf16 %v1480_v4 }
  0x3b   :  { %1263 = vmatpush3.bf16.msra.mxu1 %v1336_v31  ;;  %1270 = vmatprep.subr.bf16.mxu0 %v1337_v60  ;;  %v367_v31 = vrot.slane %v366_v23, 1  ;;  %v436_v60 = vpack.c.bf16 %v188_v45, %v188_v45  ;;  %v442_v61 = vpack.c.bf16 %v224_v47, %v224_v47  ;;  %v448_v62 = vpack.c.bf16 %v260_v49, %v260_v49 }
  0x3c   :  { %v332_v53 = vadd.f32 %v331_v30, %v330_v22  ;;  %v454_v0 = vpack.c.bf16 %v296_v51, %v296_v51  ;;  %v664_v13 = vunpack.c.l.b16 %v472_v3  ;;  %v102_v22 = vunpack.c.h.bf16 %v1476_v58 }
  0x3d   :  { %v368_v55 = vadd.f32 %v367_v31, %v366_v23  ;;  %v628_v6 = vunpack.c.l.b16 %v436_v60  ;;  %v634_v7 = vunpack.c.l.b16 %v442_v61  ;;  %v640_v8 = vunpack.c.l.b16 %v448_v62 }
  0x3e   :  { %v460_v1 = vpack.c.bf16 %v332_v53, %v332_v53  ;;  %v646_v10 = vunpack.c.l.b16 %v454_v0  ;;  %v107_v23 = vunpack.c.l.bf16 %v1478_v63  ;;  %v114_v27 = vunpack.c.h.bf16 %v1480_v4 }
  0x3f   :  { %v466_v2 = vpack.c.bf16 %v368_v55, %v368_v55  ;;  %v683_v15 = vsel %vm669_vm0, %v628_v6, %v622_v5  ;;  %v119_v28 = vunpack.c.l.bf16 %v1482_v9  ;;  %v120_v30 = vunpack.c.h.bf16 %v1482_v9 }
  0x40   :  { %v652_v11 = vunpack.c.l.b16 %v460_v1  ;;  %v684_v20 = vsel %vm671_vm1, %v634_v7, %v683_v15  ;;  %v126_v39 = vunpack.c.h.bf16 %v1484_v14  ;;  %v132_v47 = vunpack.c.h.bf16 %v1487_v16 }
  0x41   :  { %v658_v12 = vunpack.c.l.b16 %v466_v2  ;;  %v685_v25 = vsel %vm673_vm2, %v640_v8, %v684_v20  ;;  %v138_v53 = vunpack.c.h.bf16 %v1493_v21  ;;  %v159_v55 = vrot.slane %v96_v18, 4 }
  0x42   :  { %v686_v29 = vsel %vm675_vm3, %v646_v10, %v685_v25  ;;  %v195_v56 = vrot.slane %v102_v22, 4  ;;  %v231_v60 = vrot.slane %v108_v24, 4  ;;  %v267_v61 = vrot.slane %v114_v27, 4 }
  0x43   :  { %v687_v41 = vsel %vm677_vm4, %v652_v11, %v686_v29  ;;  %v303_v62 = vrot.slane %v120_v30, 4  ;;  %v160_v1 = vadd.f32 %v159_v55, %v96_v18  ;;  %v339_v3 = vrot.slane %v126_v39, 4 }
  0x44   :  { %v688_v51 = vsel %vm679_vm5, %v658_v12, %v687_v41  ;;  %v196_v2 = vadd.f32 %v195_v56, %v102_v22  ;;  %v232_v5 = vadd.f32 %v231_v60, %v108_v24  ;;  %v268_v6 = vadd.f32 %v267_v61, %v114_v27 }
  0x45   :  { %v689_v59 = vsel %vm681_vm6, %v664_v13, %v688_v51  ;;  %v304_v7 = vadd.f32 %v303_v62, %v120_v30  ;;  %v375_v8 = vrot.slane %v132_v47, 4  ;;  %v161_v10 = vrot.slane %v160_v1, 2 }
  0x46   :  { %v719_v0 = vpack.c.b16 %v689_v59, %v689_v59  ;;  %v197_v11 = vrot.slane %v196_v2, 2  ;;  %v340_v12 = vadd.f32 %v339_v3, %v126_v39  ;;  %v411_v15 = vrot.slane %v138_v53, 4 }
  0x47   :  { %v233_v20 = vrot.slane %v232_v5, 2  ;;  %v269_v25 = vrot.slane %v268_v6, 2  ;;  %v305_v29 = vrot.slane %v304_v7, 2  ;;  %v376_v13 = vadd.f32 %v375_v8, %v132_v47 }
  0x48   :  { %1050 = vmatprep.mubr.bf16.mxu0 %v719_v0  ;;  %v162_v41 = vadd.f32 %v161_v10, %v160_v1  ;;  %v198_v51 = vadd.f32 %v197_v11, %v196_v2  ;;  %v341_v49 = vrot.slane %v340_v12, 2  ;;  %v412_v59 = vadd.f32 %v411_v15, %v138_v53 }
  0x49   :  { %v234_v18 = vadd.f32 %v233_v20, %v232_v5  ;;  %v270_v22 = vadd.f32 %v269_v25, %v268_v6  ;;  %v306_v55 = vadd.f32 %v305_v29, %v304_v7  ;;  %v377_v24 = vrot.slane %v376_v13, 2 }
  0x4a   :  { %v163_v27 = vrot.slane %v162_v41, 1  ;;  %v199_v30 = vrot.slane %v198_v51, 1  ;;  %v342_v56 = vadd.f32 %v341_v49, %v340_v12  ;;  %v413_v60 = vrot.slane %v412_v59, 2 }
  0x4b   :  { %v235_v61 = vrot.slane %v234_v18, 1  ;;  %v271_v62 = vrot.slane %v270_v22, 1  ;;  %v307_v39 = vrot.slane %v306_v55, 1  ;;  %v378_v0 = vadd.f32 %v377_v24, %v376_v13 }
  0x4c   :  { %v164_v3 = vadd.f32 %v163_v27, %v162_v41  ;;  %v200_v45 = vadd.f32 %v199_v30, %v198_v51  ;;  %v343_v31 = vrot.slane %v342_v56, 1  ;;  %v414_v47 = vadd.f32 %v413_v60, %v412_v59 }
  0x4d   :  { %v236_v1 = vadd.f32 %v235_v61, %v234_v18  ;;  %v272_v2 = vadd.f32 %v271_v62, %v270_v22  ;;  %v308_v8 = vadd.f32 %v307_v39, %v306_v55  ;;  %v379_v53 = vrot.slane %v378_v0, 1 }
  0x4e   :  { %v344_v5 = vadd.f32 %v343_v31, %v342_v56  ;;  %v415_v6 = vrot.slane %v414_v47, 1  ;;  %v432_v7 = vpack.c.bf16 %v164_v3, %v164_v3  ;;  %v438_v10 = vpack.c.bf16 %v200_v45, %v200_v45 }
  0x4f   :  { %v380_v11 = vadd.f32 %v379_v53, %v378_v0  ;;  %v444_v15 = vpack.c.bf16 %v236_v1, %v236_v1  ;;  %v450_v49 = vpack.c.bf16 %v272_v2, %v272_v2  ;;  %v456_v12 = vpack.c.bf16 %v308_v8, %v308_v8 }
  0x50   :  { %v416_v20 = vadd.f32 %v415_v6, %v414_v47  ;;  %v462_v25 = vpack.c.bf16 %v344_v5, %v344_v5  ;;  %v624_v29 = vunpack.c.l.b16 %v432_v7  ;;  %v630_v13 = vunpack.c.l.b16 %v438_v10 }
  0x51   :  { %v468_v41 = vpack.c.bf16 %v380_v11, %v380_v11  ;;  %v636_v51 = vunpack.c.l.b16 %v444_v15  ;;  %v642_v24 = vunpack.c.l.b16 %v450_v49  ;;  %v648_v59 = vunpack.c.l.b16 %v456_v12 }
  0x52   :  { %v474_v18 = vpack.c.bf16 %v416_v20, %v416_v20  ;;  %v654_v22 = vunpack.c.l.b16 %v462_v25  ;;  %v697_v55 = vsel %vm669_vm0, %v630_v13, %v624_v29  ;;  %v141_v31 = vrot.slane %v93_v38, 4 }
  0x53   :  { %v660_v45 = vunpack.c.l.b16 %v468_v41  ;;  %v698_v27 = vsel %vm671_vm1, %v636_v51, %v697_v55  ;;  %v177_v30 = vrot.slane %v99_v40, 4  ;;  %v213_v56 = vrot.slane %v105_v44, 4 }
  0x54   :  { %v666_v60 = vunpack.c.l.b16 %v474_v18  ;;  %v699_v61 = vsel %vm673_vm2, %v642_v24, %v698_v27  ;;  %v142_v62 = vadd.f32 %v141_v31, %v93_v38  ;;  %v249_v39 = vrot.slane %v111_v46, 4 }
  0x55   :  { %v700_v0 = vsel %vm675_vm3, %v648_v59, %v699_v61  ;;  %v178_v3 = vadd.f32 %v177_v30, %v99_v40  ;;  %v214_v47 = vadd.f32 %v213_v56, %v105_v44  ;;  %v285_v1 = vrot.slane %v117_v48, 4 }
  0x56   :  { %v701_v2 = vsel %vm677_vm4, %v654_v22, %v700_v0  ;;  %v143_v8 = vrot.slane %v142_v62, 2  ;;  %v250_v32 = vadd.f32 %v249_v39, %v111_v46  ;;  %v321_v38 = vrot.slane %v123_v50, 4 }
  0x57   :  { %v702_v53 = vsel %vm679_vm5, %v660_v45, %v701_v2  ;;  %v179_v5 = vrot.slane %v178_v3, 2  ;;  %v215_v33 = vrot.slane %v214_v47, 2  ;;  %v286_v34 = vadd.f32 %v285_v1, %v117_v48 }
  0x58   :  { %v703_v40 = vsel %vm681_vm6, %v666_v60, %v702_v53  ;;  %v144_v44 = vadd.f32 %v143_v8, %v142_v62  ;;  %v251_v6 = vrot.slane %v250_v32, 2  ;;  %v322_v7 = vadd.f32 %v321_v38, %v123_v50 }
  0x59   :  { %v721_v10 = vpack.c.b16 %v703_v40, %v703_v40  ;;  %v180_v35 = vadd.f32 %v179_v5, %v178_v3  ;;  %v216_v46 = vadd.f32 %v215_v33, %v214_v47  ;;  %v287_v11 = vrot.slane %v286_v34, 2 }
  0x5a   :  { %v145_v15 = vrot.slane %v144_v44, 1  ;;  %v252_v49 = vadd.f32 %v251_v6, %v250_v32  ;;  %v323_v12 = vrot.slane %v322_v7, 2  ;;  %v357_v20 = vrot.slane %v129_v52, 4 }
  0x5b   :  { %1090 = vmatprep.mubr.bf16.mxu1 %v721_v10  ;;  %v181_v36 = vrot.slane %v180_v35, 1  ;;  %v217_v48 = vrot.slane %v216_v46, 1  ;;  %v288_v25 = vadd.f32 %v287_v11, %v286_v34  ;;  %v393_v29 = vrot.slane %v135_v54, 4 }
  0x5c   :  { %v146_v13 = vadd.f32 %v145_v15, %v144_v44  ;;  %v253_v37 = vrot.slane %v252_v49, 1  ;;  %v324_v50 = vadd.f32 %v323_v12, %v322_v7  ;;  %v358_v41 = vadd.f32 %v357_v20, %v129_v52 }
  0x5d   :  { %v182_v51 = vadd.f32 %v181_v36, %v180_v35  ;;  %v218_v24 = vadd.f32 %v217_v48, %v216_v46  ;;  %v289_v59 = vrot.slane %v288_v25, 1  ;;  %v394_v18 = vadd.f32 %v393_v29, %v135_v54 }
  0x5e   :  { %v254_v22 = vadd.f32 %v253_v37, %v252_v49  ;;  %v325_v55 = vrot.slane %v324_v50, 1  ;;  %v359_v31 = vrot.slane %v358_v41, 2  ;;  %v429_v45 = vpack.c.bf16 %v146_v13, %v146_v13 }
  0x5f   :  { %v290_v27 = vadd.f32 %v289_v59, %v288_v25  ;;  %v395_v30 = vrot.slane %v394_v18, 2  ;;  %v435_v56 = vpack.c.bf16 %v182_v51, %v182_v51  ;;  %v441_v60 = vpack.c.bf16 %v218_v24, %v218_v24 }
  0x60   :  { %v326_v61 = vadd.f32 %v325_v55, %v324_v50  ;;  %v360_v62 = vadd.f32 %v359_v31, %v358_v41  ;;  %v447_v39 = vpack.c.bf16 %v254_v22, %v254_v22  ;;  %v621_v0 = vunpack.c.l.b16 %v429_v45 }
  0x61   :  { %v396_v42 = vadd.f32 %v395_v30, %v394_v18  ;;  %v453_v52 = vpack.c.bf16 %v290_v27, %v290_v27  ;;  %v627_v3 = vunpack.c.l.b16 %v435_v56  ;;  %v633_v47 = vunpack.c.l.b16 %v441_v60  ;;  %v1338_v18 = vld [vmem:[#allocation6 + $0x138] sm:$0xff]   ;;  %v1339_v27 = vld [vmem:[#allocation6 + $0x170] sm:$0xff]  }
  0x62   :  { %v361_v1 = vrot.slane %v360_v62, 1  ;;  %v459_v2 = vpack.c.bf16 %v326_v61, %v326_v61  ;;  %v639_v43 = vunpack.c.l.b16 %v447_v39  ;;  %v153_v54 = vrot.slane %v95_v17, 4 }
  0x63   :  { %v397_v8 = vrot.slane %v396_v42, 1  ;;  %v645_v32 = vunpack.c.l.b16 %v453_v52  ;;  %v670_v38 = vsel %vm669_vm0, %v627_v3, %v621_v0  ;;  %v189_v53 = vrot.slane %v101_v19, 4 }
  0x64   :  { %v362_v5 = vadd.f32 %v361_v1, %v360_v62  ;;  %v651_v33 = vunpack.c.l.b16 %v459_v2  ;;  %v672_v34 = vsel %vm671_vm1, %v633_v47, %v670_v38  ;;  %v154_v40 = vadd.f32 %v153_v54, %v95_v17  ;;  %v1340_v2 = vld [vmem:[#allocation6 + $0x130] sm:$0xff]  }
  0x65   :  { %v398_v44 = vadd.f32 %v397_v8, %v396_v42  ;;  %v674_v6 = vsel %vm673_vm2, %v639_v43, %v672_v34  ;;  %v190_v7 = vadd.f32 %v189_v53, %v101_v19  ;;  %v225_v10 = vrot.slane %v107_v23, 4  ;;  %v1589_v43 = vld [vmem:[#allocation3 + $0x10] sm:$0xff] }
  0x66   :  { %v465_v35 = vpack.c.bf16 %v362_v5, %v362_v5  ;;  %v676_v46 = vsel %vm675_vm3, %v645_v32, %v674_v6  ;;  %v155_v11 = vrot.slane %v154_v40, 2  ;;  %v261_v15 = vrot.slane %v113_v26, 4  ;;  %v1341_v5 = vld [vmem:[#allocation6 + $0x168] sm:$0xff]  }
  0x67   :  { %v471_v49 = vpack.c.bf16 %v398_v44, %v398_v44  ;;  %v678_v57 = vsel %vm677_vm4, %v651_v33, %v676_v46  ;;  %v191_v17 = vrot.slane %v190_v7, 2  ;;  %v226_v12 = vadd.f32 %v225_v10, %v107_v23  ;;  %v1593_v10 = vld [vmem:[#allocation3 + $0x40] sm:$0xff] }
  0x68   :  { %v657_v20 = vunpack.c.l.b16 %v465_v35  ;;  %v156_v58 = vadd.f32 %v155_v11, %v154_v40  ;;  %v262_v19 = vadd.f32 %v261_v15, %v113_v26  ;;  %v297_v36 = vrot.slane %v119_v28, 4 }
  0x69   :  { %v663_v48 = vunpack.c.l.b16 %v471_v49  ;;  %v192_v25 = vadd.f32 %v191_v17, %v190_v7  ;;  %v227_v29 = vrot.slane %v226_v12, 2  ;;  %v1686_v13 = vunpack.c.l.bf16 %v1484_v14  ;;  %v1342_v49 = vld [vmem:[#allocation6 + $0x128] sm:$0xff]  }
  0x6a   :  { %v680_v50 = vsel %vm679_vm5, %v657_v20, %v678_v57  ;;  %v157_v41 = vrot.slane %v156_v58, 1  ;;  %v263_v51 = vrot.slane %v262_v19, 2  ;;  %v298_v63 = vadd.f32 %v297_v36, %v119_v28  ;;  %v1343_v20 = vld [vmem:[#allocation6 + $0x160] sm:$0xff]  }
  0x6b   :  { %v333_v37 = vrot.slane %v1686_v13, 4  ;;  %v682_v23 = vsel %vm681_vm6, %v663_v48, %v680_v50  ;;  %v193_v4 = vrot.slane %v192_v25, 1  ;;  %v228_v26 = vadd.f32 %v227_v29, %v226_v12  ;;  %v1601_v29 = vld [vmem:[#allocation3 + $0xa0] sm:$0xff] }
  0x6c   :  { %v1687_v24 = vmov %v1686_v13  ;;  %v718_v22 = vpack.c.b16 %v682_v23, %v682_v23  ;;  %v158_v55 = vadd.f32 %v157_v41, %v156_v58  ;;  %v264_v31 = vadd.f32 %v263_v51, %v262_v19  ;;  %v1597_v58 = vld [vmem:[#allocation3 + $0x70] sm:$0xff] }
  0x6d   :  { %v334_v59 = vadd.f32 %v333_v37, %v1687_v24  ;;  %v299_v45 = vrot.slane %v298_v63, 2  ;;  %v194_v30 = vadd.f32 %v193_v4, %v192_v25  ;;  %v229_v56 = vrot.slane %v228_v26, 1  ;;  %v1605_v51 = vld [vmem:[#allocation3 + $0xd0] sm:$0xff]  ;;  %v1608_v24 = vld [vmem:[#allocation3 + $0x100] sm:$0xff] }
  0x6e   :  { %v1688_v61 = vunpack.c.l.bf16 %v1487_v16  ;;  %1051 = vmatmul.mubr.bf16.vlgmr.msra.gmra.mxu0 %v718_v22  ;;  %v265_v28 = vrot.slane %v264_v31, 1  ;;  %v1689_v39 = vunpack.c.l.bf16 %v1493_v21  ;;  %v431_v14 = vpack.c.bf16 %v158_v55, %v158_v55 }
  0x6f   :  { %v335_v60 = vrot.slane %v334_v59, 2  ;;  %v300_v62 = vadd.f32 %v299_v45, %v298_v63  ;;  %v230_v42 = vadd.f32 %v229_v56, %v228_v26  ;;  %v437_v1 = vpack.c.bf16 %v194_v30, %v194_v30  ;;  %1271 = vmatpush3.bf16.msra.mxu0 %v1338_v18  ;;  %v1344_v26 = vld [vmem:[#allocation6 + $0x120] sm:$0xff]   ;;  %v1345_v45 = vld [vmem:[#allocation6 + $0x158] sm:$0xff]  }
  0x70   :  { %v369_v9 = vrot.slane %v1688_v61, 4  ;;  %v405_v0 = vrot.slane %v1689_v39, 4  ;;  %v1690_v3 = vmov %v1688_v61  ;;  %v266_v54 = vadd.f32 %v265_v28, %v264_v31  ;;  %1272 = vmatprep.subr.bf16.mxu0 %v1339_v27  ;;  %v1615_v27 = vld [vmem:[#allocation3 + $0x160] sm:$0xff] }
  0x71   :  { %v336_v52 = vadd.f32 %v335_v60, %v334_v59  ;;  %v301_v8 = vrot.slane %v300_v62, 1  ;;  %v1691_v32 = vmov %v1689_v39  ;;  %v623_v53 = vunpack.c.l.b16 %v431_v14  ;;  %v1610_v59 = vld [vmem:[#allocation3 + $0x130] sm:$0xff] }
  0x72   :  { %v370_v47 = vadd.f32 %v369_v9, %v1690_v3  ;;  %v406_v38 = vadd.f32 %v405_v0, %v1691_v32  ;;  %v443_v40 = vpack.c.bf16 %v230_v42, %v230_v42  ;;  %v629_v44 = vunpack.c.l.b16 %v437_v1 }
  0x73   :  { %v337_v33 = vrot.slane %v336_v52, 1  ;;  %v302_v6 = vadd.f32 %v301_v8, %v300_v62  ;;  %v449_v7 = vpack.c.bf16 %v266_v54, %v266_v54  ;;  %v97_v35 = vunpack.c.l.bf16 %v1589_v43  ;;  %1273 = vmatpush3.bf16.msra.mxu0 %v1340_v2  ;;  %v1347_v54 = vld [vmem:[#allocation6 + $0x150] sm:$0xff]  }
  0x74   :  { %v371_v34 = vrot.slane %v370_v47, 2  ;;  %v407_v16 = vrot.slane %v406_v38, 2  ;;  %v635_v15 = vunpack.c.l.b16 %v443_v40  ;;  %v690_v21 = vsel %vm669_vm0, %v629_v44, %v623_v53  ;;  %1274 = vmatprep.subr.bf16.mxu0 %v1341_v5 }
  0x75   :  { %v338_v46 = vadd.f32 %v337_v33, %v336_v52  ;;  %v455_v17 = vpack.c.bf16 %v302_v6, %v302_v6  ;;  %v641_v12 = vunpack.c.l.b16 %v449_v7  ;;  %v98_v19 = vunpack.c.h.bf16 %v1589_v43  ;;  %v1346_v52 = vld [vmem:[#allocation6 + $0x118] sm:$0xff]  }
  0x76   :  { %v372_v11 = vadd.f32 %v371_v34, %v370_v47  ;;  %v408_v57 = vadd.f32 %v407_v16, %v406_v38  ;;  %v691_v25 = vsel %vm671_vm1, %v635_v15, %v690_v21  ;;  %v103_v13 = vunpack.c.l.bf16 %v1593_v10 }
  0x77   :  { %v461_v48 = vpack.c.bf16 %v338_v46, %v338_v46  ;;  %v647_v50 = vunpack.c.l.b16 %v455_v17  ;;  %v692_v41 = vsel %vm673_vm2, %v641_v12, %v691_v25  ;;  %v104_v63 = vunpack.c.h.bf16 %v1593_v10  ;;  %1275 = vmatpush3.bf16.msra.mxu0 %v1342_v49  ;;  %v1348_v46 = vld [vmem:[#allocation6 + $0x110] sm:$0xff]   ;;  %v1349_v49 = vld [vmem:[#allocation6 + $0x148] sm:$0xff]  }
  0x78   :  { %v373_v36 = vrot.slane %v372_v11, 1  ;;  %v409_v37 = vrot.slane %v408_v57, 1  ;;  %v109_v18 = vunpack.c.l.bf16 %v1597_v58  ;;  %v110_v22 = vunpack.c.h.bf16 %v1597_v58  ;;  %1276 = vmatprep.subr.bf16.mxu0 %v1343_v20 }
  0x79   :  { %v653_v4 = vunpack.c.l.b16 %v461_v48  ;;  %v693_v31 = vsel %vm675_vm3, %v647_v50, %v692_v41  ;;  %v115_v30 = vunpack.c.l.bf16 %v1601_v29  ;;  %v116_v56 = vunpack.c.h.bf16 %v1601_v29 }
  0x7a   :  { %v374_v23 = vadd.f32 %v373_v36, %v372_v11  ;;  %v410_v55 = vadd.f32 %v409_v37, %v408_v57  ;;  %v121_v9 = vunpack.c.l.bf16 %v1605_v51  ;;  %v122_v28 = vunpack.c.h.bf16 %v1605_v51 }
  0x7b   :  { %v694_v61 = vsel %vm677_vm4, %v653_v4, %v693_v31  ;;  %v127_v39 = vunpack.c.l.bf16 %v1608_v24  ;;  %v128_v0 = vunpack.c.h.bf16 %v1608_v24  ;;  %v133_v14 = vunpack.c.l.bf16 %v1610_v59  ;;  %1277 = vmatpush3.bf16.msra.mxu0 %v1344_v26  ;;  %v1351_v31 = vld [vmem:[#allocation6 + $0x140] sm:$0xff]  }
  0x7c   :  { %v467_v60 = vpack.c.bf16 %v374_v23, %v374_v23  ;;  %v473_v62 = vpack.c.bf16 %v410_v55, %v410_v55  ;;  %v134_v3 = vunpack.c.h.bf16 %v1610_v59  ;;  %v139_v47 = vunpack.c.l.bf16 %v1615_v27  ;;  %1278 = vmatprep.subr.bf16.mxu0 %v1345_v45  ;;  %v1350_v23 = vld [vmem:[#allocation6 + $0x108] sm:$0xff]  }
  0x7d   :  { %v140_v1 = vunpack.c.h.bf16 %v1615_v27  ;;  %v171_v8 = vrot.slane %v98_v19, 4  ;;  %v207_v32 = vrot.slane %v104_v63, 4  ;;  %v243_v38 = vrot.slane %v110_v22, 4 }
  0x7e   :  { %v659_v42 = vunpack.c.l.b16 %v467_v60  ;;  %v665_v2 = vunpack.c.l.b16 %v473_v62  ;;  %v279_v5 = vrot.slane %v116_v56, 4  ;;  %v315_v33 = vrot.slane %v122_v28, 4 }
  0x7f   :  { %v351_v34 = vrot.slane %v128_v0, 4  ;;  %v172_v44 = vadd.f32 %v171_v8, %v98_v19  ;;  %v208_v6 = vadd.f32 %v207_v32, %v104_v63  ;;  %v244_v16 = vadd.f32 %v243_v38, %v110_v22  ;;  %1279 = vmatpush3.bf16.msra.mxu0 %v1346_v52  ;;  %v1352_v8 = vld [vmem:[#allocation6 + $0x100] sm:$0xff]  }
  0x80   :  { %v695_v53 = vsel %vm679_vm5, %v659_v42, %v694_v61  ;;  %v280_v11 = vadd.f32 %v279_v5, %v116_v56  ;;  %v316_v15 = vadd.f32 %v315_v33, %v122_v28  ;;  %1280 = vmatprep.subr.bf16.mxu0 %v1347_v54  ;;  %v387_v20 = vrot.slane %v134_v3, 4 }
  0x81   :  { %v696_v40 = vsel %vm681_vm6, %v665_v2, %v695_v53  ;;  %v352_v21 = vadd.f32 %v351_v34, %v128_v0  ;;  %v173_v57 = vrot.slane %v172_v44, 2  ;;  %v209_v17 = vrot.slane %v208_v6, 2 }
  0x82   :  { %v720_v7 = vpack.c.b16 %v696_v40, %v696_v40  ;;  %v245_v12 = vrot.slane %v244_v16, 2  ;;  %v281_v36 = vrot.slane %v280_v11, 2  ;;  %v317_v48 = vrot.slane %v316_v15, 2 }
  0x83   :  { %v353_v25 = vrot.slane %v352_v21, 2  ;;  %v423_v37 = vrot.slane %v140_v1, 4  ;;  %v174_v19 = vadd.f32 %v173_v57, %v172_v44  ;;  %v210_v50 = vadd.f32 %v209_v17, %v208_v6  ;;  %1281 = vmatpush3.bf16.msra.mxu0 %v1348_v46 }
  0x84   :  { %1091 = vmatmul.mubr.bf16.vlgmr.msra.gmra.mxu1 %v720_v7  ;;  %v246_v41 = vadd.f32 %v245_v12, %v244_v16  ;;  %v388_v63 = vadd.f32 %v387_v20, %v134_v3  ;;  %v282_v4 = vadd.f32 %v281_v36, %v280_v11  ;;  %v318_v26 = vadd.f32 %v317_v48, %v316_v15 }
  0x85   :  { %v354_v22 = vadd.f32 %v353_v25, %v352_v21  ;;  %v424_v55 = vadd.f32 %v423_v37, %v140_v1  ;;  %1282 = vmatprep.subr.bf16.mxu0 %v1349_v49  ;;  %v175_v45 = vrot.slane %v174_v19, 1  ;;  %v211_v56 = vrot.slane %v210_v50, 1 }
  0x86   :  { %v247_v60 = vrot.slane %v246_v41, 1  ;;  %v389_v61 = vrot.slane %v388_v63, 2  ;;  %v283_v28 = vrot.slane %v282_v4, 1  ;;  %v319_v62 = vrot.slane %v318_v26, 1 }
  0x87   :  { %v355_v0 = vrot.slane %v354_v22, 1  ;;  %v425_v42 = vrot.slane %v424_v55, 2  ;;  %v176_v52 = vadd.f32 %v175_v45, %v174_v19  ;;  %v212_v2 = vadd.f32 %v211_v56, %v210_v50  ;;  %1283 = vmatpush3.bf16.msra.mxu0 %v1350_v23 }
  0x88   :  { %v248_v54 = vadd.f32 %v247_v60, %v246_v41  ;;  %v390_v3 = vadd.f32 %v389_v61, %v388_v63  ;;  %v284_v32 = vadd.f32 %v283_v28, %v282_v4  ;;  %v320_v38 = vadd.f32 %v319_v62, %v318_v26  ;;  %1284 = vmatprep.subr.bf16.mxu0 %v1351_v31 }
  0x89   :  { %v356_v53 = vadd.f32 %v355_v0, %v354_v22  ;;  %v426_v1 = vadd.f32 %v425_v42, %v424_v55  ;;  %v434_v33 = vpack.c.bf16 %v176_v52, %v176_v52  ;;  %v440_v34 = vpack.c.bf16 %v212_v2, %v212_v2 }
  0x8a   :  { %v391_v5 = vrot.slane %v390_v3, 1  ;;  %v446_v40 = vpack.c.bf16 %v248_v54, %v248_v54  ;;  %v452_v6 = vpack.c.bf16 %v284_v32, %v284_v32  ;;  %v458_v16 = vpack.c.bf16 %v320_v38, %v320_v38 }
  0x8b   :  { %v427_v44 = vrot.slane %v426_v1, 1  ;;  %v464_v7 = vpack.c.bf16 %v356_v53, %v356_v53  ;;  %v626_v11 = vunpack.c.l.b16 %v434_v33  ;;  %v632_v15 = vunpack.c.l.b16 %v440_v34  ;;  %1285 = vmatpush3.bf16.msra.mxu0 %v1352_v8 }
  0x8c   :  { %v392_v46 = vadd.f32 %v391_v5, %v390_v3  ;;  %v638_v21 = vunpack.c.l.b16 %v446_v40  ;;  %v644_v57 = vunpack.c.l.b16 %v452_v6  ;;  %v650_v17 = vunpack.c.l.b16 %v458_v16 }
  0x8d   :  { %v428_v49 = vadd.f32 %v427_v44, %v426_v1  ;;  %v656_v12 = vunpack.c.l.b16 %v464_v7  ;;  %v711_v36 = vsel %vm669_vm0, %v632_v15, %v626_v11  ;;  %v165_v48 = vrot.slane %v97_v35, 4 }
  0x8e   :  { %v470_v20 = vpack.c.bf16 %v392_v46, %v392_v46  ;;  %v201_v25 = vrot.slane %v103_v13, 4  ;;  %v712_v19 = vsel %vm671_vm1, %v638_v21, %v711_v36  ;;  %v237_v50 = vrot.slane %v109_v18, 4 }
  0x8f   :  { %v476_v37 = vpack.c.bf16 %v428_v49, %v428_v49  ;;  %v273_v41 = vrot.slane %v115_v30, 4  ;;  %v713_v23 = vsel %vm673_vm2, %v644_v57, %v712_v19  ;;  %v166_v4 = vadd.f32 %v165_v48, %v97_v35 }
  0x90   :  { %v662_v63 = vunpack.c.l.b16 %v470_v20  ;;  %v202_v26 = vadd.f32 %v201_v25, %v103_v13  ;;  %v714_v55 = vsel %vm675_vm3, %v650_v17, %v713_v23  ;;  %v238_v31 = vadd.f32 %v237_v50, %v109_v18 }
  0x91   :  { %v668_v22 = vunpack.c.l.b16 %v476_v37  ;;  %v274_v45 = vadd.f32 %v273_v41, %v115_v30  ;;  %v715_v56 = vsel %vm677_vm4, %v656_v12, %v714_v55  ;;  %v167_v60 = vrot.slane %v166_v4, 2 }
  0x92   :  { %v203_v61 = vrot.slane %v202_v26, 2  ;;  %v309_v43 = vrot.slane %v121_v9, 4  ;;  %v716_v35 = vsel %vm679_vm5, %v662_v63, %v715_v56  ;;  %v239_v10 = vrot.slane %v238_v31, 2 }
  0x93   :  { %v275_v13 = vrot.slane %v274_v45, 2  ;;  %v345_v28 = vrot.slane %v127_v39, 4  ;;  %v717_v58 = vsel %vm681_vm6, %v668_v22, %v716_v35  ;;  %v168_v18 = vadd.f32 %v167_v60, %v166_v4 }
  0x94   :  { %v204_v62 = vadd.f32 %v203_v61, %v202_v26  ;;  %v310_v29 = vadd.f32 %v309_v43, %v121_v9  ;;  %v723_v30 = vpack.c.b16 %v717_v58, %v717_v58  ;;  %v240_v0 = vadd.f32 %v239_v10, %v238_v31 }
  0x95   :  { %v276_v42 = vadd.f32 %v275_v13, %v274_v45  ;;  %v346_v52 = vadd.f32 %v345_v28, %v127_v39  ;;  %v169_v2 = vrot.slane %v168_v18, 1  ;;  %v381_v8 = vrot.slane %v133_v14, 4 }
  0x96   :  { %v205_v54 = vrot.slane %v204_v62, 1  ;;  %v311_v3 = vrot.slane %v310_v29, 2  ;;  %1130 = vmatprep.mubr.bf16.mxu0 %v723_v30  ;;  %v241_v32 = vrot.slane %v240_v0, 1  ;;  %v417_v51 = vrot.slane %v139_v47, 4 }
  0x97   :  { %v277_v38 = vrot.slane %v276_v42, 1  ;;  %v347_v53 = vrot.slane %v346_v52, 2  ;;  %v170_v9 = vadd.f32 %v169_v2, %v168_v18  ;;  %v382_v24 = vadd.f32 %v381_v8, %v133_v14 }
  0x98   :  { %v206_v1 = vadd.f32 %v205_v54, %v204_v62  ;;  %v312_v5 = vadd.f32 %v311_v3, %v310_v29  ;;  %v242_v39 = vadd.f32 %v241_v32, %v240_v0  ;;  %v418_v40 = vadd.f32 %v417_v51, %v139_v47 }
  0x99   :  { %v278_v33 = vadd.f32 %v277_v38, %v276_v42  ;;  %v348_v34 = vadd.f32 %v347_v53, %v346_v52  ;;  %v383_v6 = vrot.slane %v382_v24, 2  ;;  %v433_v16 = vpack.c.bf16 %v170_v9, %v170_v9  ;;  %v1225_v38 = vld [vmem:[%s1684_s2] ss:$0 sm:$0xff] }
  0x9a   :  { %v313_v44 = vrot.slane %v312_v5, 1  ;;  %v439_v7 = vpack.c.bf16 %v206_v1, %v206_v1  ;;  %v419_v11 = vrot.slane %v418_v40, 2  ;;  %v445_v15 = vpack.c.bf16 %v242_v39, %v242_v39 }
  0x9b   :  { %v349_v46 = vrot.slane %v348_v34, 1  ;;  %v451_v21 = vpack.c.bf16 %v278_v33, %v278_v33  ;;  %v384_v57 = vadd.f32 %v383_v6, %v382_v24  ;;  %v625_v17 = vunpack.c.l.b16 %v433_v16 }
  0x9c   :  { %v314_v49 = vadd.f32 %v313_v44, %v312_v5  ;;  %v631_v12 = vunpack.c.l.b16 %v439_v7  ;;  %v420_v14 = vadd.f32 %v419_v11, %v418_v40  ;;  %v637_v20 = vunpack.c.l.b16 %v445_v15 }
  0x9d   :  { %v350_v59 = vadd.f32 %v349_v46, %v348_v34  ;;  %v643_v36 = vunpack.c.l.b16 %v451_v21  ;;  %v385_v48 = vrot.slane %v384_v57, 1 }
  0x9e   :  { %v457_v25 = vpack.c.bf16 %v314_v49, %v314_v49  ;;  %v704_v27 = vsel %vm669_vm0, %v631_v12, %v625_v17  ;;  %v421_v47 = vrot.slane %v420_v14, 1 }
  0x9f   :  { %v463_v37 = vpack.c.bf16 %v350_v59, %v350_v59  ;;  %v705_v19 = vsel %vm671_vm1, %v637_v20, %v704_v27  ;;  %v386_v50 = vadd.f32 %v385_v48, %v384_v57 }
  0xa0   :  { %v649_v41 = vunpack.c.l.b16 %v457_v25  ;;  %v706_v63 = vsel %vm673_vm2, %v643_v36, %v705_v19  ;;  %v422_v23 = vadd.f32 %v421_v47, %v420_v14 }
  0xa1   :  { %v655_v4 = vunpack.c.l.b16 %v463_v37  ;;  %v469_v26 = vpack.c.bf16 %v386_v50, %v386_v50 }
  0xa2   :  { %v707_v22 = vsel %vm675_vm3, %v649_v41, %v706_v63  ;;  %v475_v55 = vpack.c.bf16 %v422_v23, %v422_v23 }
  0xa3   :  { %v708_v31 = vsel %vm677_vm4, %v655_v4, %v707_v22  ;;  %v661_v45 = vunpack.c.l.b16 %v469_v26 }
  0xa4   :  { %v667_v56 = vunpack.c.l.b16 %v475_v55 }
  0xa5   :  { %v709_v60 = vsel %vm679_vm5, %v661_v45, %v708_v31 }
  0xa6   :  { %v710_v61 = vsel %vm681_vm6, %v667_v56, %v709_v60 }
  0xa7   :  { %v722_v43 = vpack.c.b16 %v710_v61, %v710_v61 }
  0xa9   :  { %1131 = vmatmul.mubr.bf16.vlgmr.msra.gmra.mxu0 %v722_v43 }
 0x12e   :  { %v1242_v35 = vpop.f32.mrf.mxu0 }
 0x130   :  { %v1243_v10 = vpop.f32.mrf.mxu0 }
 0x131   :  { %v1244_v30 = vadd.f32 %v1243_v10, %v1242_v35 }
 0x132   :  { %v1245_v13 = vpop.f32.mrf.mxu0 }
 0x134   :  { %v1246_v28 = vpop.f32.mrf.mxu0 }
 0x144   :  { %v1264_v58 = vpop.f32.mrf.mxu1 }
 0x146   :  { %v1265_v18 = vpop.f32.mrf.mxu1 }
 0x147   :  { %v1266_v0 = vadd.f32 %v1265_v18, %v1264_v58 }
 0x148   :  { %v1267_v62 = vpop.f32.mrf.mxu1 }
 0x149   :  { %v1093_v2 = vadd.f32 %v1266_v0, %v1244_v30 }
 0x14a   :  { %v1268_v29 = vpop.f32.mrf.mxu1 }
 0x169   :  { %v1286_v42 = vpop.f32.mrf.mxu0 }
 0x16b   :  { %v1287_v52 = vpop.f32.mrf.mxu0 }
 0x16c   :  { %v1288_v54 = vadd.f32 %v1287_v52, %v1286_v42 }
 0x16d   :  { %v1289_v3 = vpop.f32.mrf.mxu0 }
 0x16e   :  { %v1133_v8 = vadd.f32 %v1288_v54, %v1093_v2 }
 0x16f   :  { %v1290_v32 = vpop.f32.mrf.mxu0 }
 0x170   :  { %v1138_v53 = vmul.f32 0.125, %v1133_v8 }
 0x172   :  { %v1146_v51 = vadd.f32 %v1225_v38, %v1138_v53 }
 0x174   :  { %1147 = vmax.xlane.f32.xlu0 %v1146_v51 }
 0x1fd   :  { %v1148_v9 = vpop.xlane.xlu0 %1147 }
 0x1fe   :  { %v1149_v1 = vsub.f32 %v1146_v51, %v1148_v9 }
 0x200   :  { %v1150_v5 = vmul.f32 1.442695, %v1149_v1 }
 0x202   :  { %1353 = vpow2.f32 %v1150_v5 }
 0x20f   :  { %v1354_v24 = vpop.eup %1353 }
 0x210   :  { %1152 = vadd.xlane.f32.xlu0 %v1354_v24 }
 0x299   :  { %v1153_v39 = vpop.xlane.xlu0 %1152 }
 0x29a   :  { %1355 = vrcp.f32 %v1153_v39 }
 0x2a7   :  { %v1356_v33 = vpop.eup %1355 }
 0x2a8   :  { %v1155_v34 = vmul.f32 %v1356_v33, %v1354_v24 }
 0x2aa   :  { %1156 = vst [vmem:[#allocation8] sm:$0xff] %v1155_v34 }
 0x2ab   :  { %1161 = vsyncadd [#allocation5], 96  ;;  %s1413_s5 = smov [#allocation8]  }
 0x2ac   :  { %s1162_s6 = sshll.u32 %s1413_s5, 4  ;;  %s1163_s6 = int_to_ptr.vmem [resolvable:$true] %s1162_s6 }
 0x2ad   :  { %s1377_s7 = scalar_lea.vmem %s1163_s6, 32  ;;  %s1381_s2 = scalar_lea.vmem %s1163_s6, 128 }
 0x2ae   :  { %p1378_p5 = scmp.ne.s32.totalorder %s1163_s6, %s1377_s7  ;;  %p1382_p6 = scmp.lt.s32.totalorder %s1163_s6, %s1163_s6 }
 0x2af   :  { %p1383_p7 = scmp.lt.s32.totalorder %s1381_s2, %s1377_s7 }
 0x2b1   :  { %p1384_p8 = por %p1383_p7, %p1382_p6 }
 0x2b3   :  { %p1385_p9 = pnand %p1384_p8, %p1378_p5 }
 0x2b5   :  { %1388 = shalt.err (!%p1385_p9)
}
 0x2b6   :  { %s1414_s8 = smov 32   ;;  %s1415_s9 = smov 2  }
 0x2b7   :  { %1168 = dma.vmem_to_hbm [thread:$0]  %s1163_s6, 32, %s1685_s3, [#allocation5], %s1414_s8, %s1414_s8, %s1415_s9  }
 0x2b8   :  { %1401 = dma.done.wait [#allocation5], 128  }
 0x2b9   :  { %1402 = vsyncadd [#allocation5], 4294967168 }
 0x2ba   :  { %1172 = vsyncpa [#allocation4], 1 }
 0x2bb   :  { %1173 = vsyncpa [#allocation7], 1 }
 0x2bc   :  { %1174 = vsyncpa [#allocation5], 1 }

</bundles_post_ra>
